<compile_context>
chip_gen: v7x
topology: tpu7x:2x2x1
jax: 0.10.0
libtpu: 0.0.40
codegen_flags: <defaults>
</compile_context>

<pallas_src>
import jax
import jax.numpy as jnp
from jax.experimental import pallas as pl
from jax.experimental.pallas import tpu as pltpu

BN_EPS = 1e-5
LANE = 128


def _stats_kernel(a_ref, w_ref, stats_ref):
    """Pass 1: conv tile (matmul) + accumulate per-channel sum / sum-of-squares.

    a_ref:     (TM, K)  bf16 im2col patch tile
    w_ref:     (K, CP)  bf16 reshaped conv weight (CP = Cout padded to 128)
    stats_ref: (2, CP)  f32; row 0 = sum, row 1 = sum of squares. Same block index for
                        every grid step -> stays resident in VMEM as an accumulator.
    """
    i = pl.program_id(0)

    @pl.when(i == 0)
    def _():
        stats_ref[...] = jnp.zeros_like(stats_ref)

    acc = jnp.dot(a_ref[...], w_ref[...], preferred_element_type=jnp.float32)  # (TM, CP) f32
    s = jnp.sum(acc, axis=0, keepdims=True)
    ss = jnp.sum(acc * acc, axis=0, keepdims=True)
    stats_ref[...] += jnp.concatenate([s, ss], axis=0)


def _apply_kernel(a_ref, w_ref, scale_ref, shift_ref, o_ref):
    """Pass 2: recompute conv tile, apply folded BN (one FMA per element) + ReLU.

    scale = gamma * inv_std, shift = beta - mean * scale were computed outside
    (tiny per-channel vectors), so the per-element work is a single FMA + max.
    """
    acc = jnp.dot(a_ref[...], w_ref[...], preferred_element_type=jnp.float32)  # (TM, CP)
    y = acc * scale_ref[...] + shift_ref[...]
    o_ref[...] = jnp.maximum(y, 0.0).astype(o_ref.dtype)


def base_conv(x_nchw, weight_oihw, gamma, beta, stride, *, tm=256):
    """Forward of BaseConv. x_nchw: (N, Cin, H, W), weight: (Cout, Cin, k, k).

    tm = rows of the (M, K) im2col matrix per grid step. For large shapes sweep
    tm in {512, 1024, 2048} subject to the per-generation VMEM budget
    (roughly 2*(tm*K*2 + tm*Cout_pad*4) bytes of double-buffered tiles must stay
    well under ~20-24 MiB on v7x, ~2x that on v5e/v6e).
    """
    n, cin, h, w = x_nchw.shape
    cout, _, k, _ = weight_oihw.shape
    p = (k - 1) // 2

    # --- glue: NCHW -> NHWC (bf16), zero pad, im2col (patch channel order (ky,kx,cin)) ---
    x = jnp.transpose(x_nchw, (0, 2, 3, 1)).astype(jnp.bfloat16)        # (N, H, W, Cin)
    x = jnp.pad(x, ((0, 0), (p, p), (p, p), (0, 0)))
    oh = (h + 2 * p - k) // stride + 1
    ow = (w + 2 * p - k) // stride + 1
    cols = [x[:, ky:ky + stride * oh:stride, kx:kx + stride * ow:stride, :]
            for ky in range(k) for kx in range(k)]
    patches = jnp.concatenate(cols, axis=-1)                            # (N, OH, OW, k*k*Cin) bf16
    # TODO(synk): build patches in-kernel from an NHWC input tile with a (k-1)-row halo
    # (or as k*k shifted in-kernel matmuls) to remove the k^2 HBM blowup of host im2col;
    # for now the patches are at least emitted in bf16 to halve that traffic.

    m_rows = n * oh * ow
    k_dim = k * k * cin
    m_pad = pl.cdiv(m_rows, tm) * tm
    cp = pl.cdiv(cout, LANE) * LANE                                      # lane-dense Cout

    a = patches.reshape(m_rows, k_dim)
    if m_pad > m_rows:
        # Zero rows contribute 0 to sum/sumsq; stats divide by the true m_rows, so padding
        # does not perturb the BN statistics. Padded rows are sliced off at the end.
        a = jnp.pad(a, ((0, m_pad - m_rows), (0, 0)))

    # weight (Cout, Cin, ky, kx) -> (ky, kx, Cin, Cout) -> (K, Cout) -> zero-pad to (K, CP)
    w_mat = jnp.transpose(weight_oihw, (2, 3, 1, 0)).reshape(k_dim, cout)
    w_mat = jnp.pad(w_mat, ((0, 0), (0, cp - cout))).astype(jnp.bfloat16)

    grid = (m_pad // tm,)

    # Explicit scoped-VMEM request with headroom (double-buffered input/output tiles +
    # resident weight), clamped to the smallest physical VMEM (v7x: 64 MiB).
    tile_bytes = 2 * (tm * k_dim * 2 + tm * cp * 4) + k_dim * cp * 2 * 2 + 8 * cp * 4
    vmem_limit = min(tile_bytes + (4 << 20), 64 << 20)

    # ---- pass 1: accumulate per-channel sum & sum-of-squares across all M tiles ----
    stats = pl.pallas_call(
        _stats_kernel,
        out_shape=jax.ShapeDtypeStruct((2, cp), jnp.float32),
        grid=grid,
        in_specs=[
            pl.BlockSpec((tm, k_dim), lambda i: (i, 0)),
            pl.BlockSpec((k_dim, cp), lambda i: (0, 0)),
        ],
        out_specs=pl.BlockSpec((2, cp), lambda i: (0, 0)),               # resident accumulator
        compiler_params=pltpu.CompilerParams(
            dimension_semantics=("arbitrary",),                          # stats reduce over M
            vmem_limit_bytes=vmem_limit),
    )(a, w_mat)

    # ---- tiny per-channel finalize (XLA glue): fold BN into scale/shift constants ----
    # NOTE: E[x^2]-E[x]^2 can cancel for huge M with large activations; post-conv
    # activations here are O(1), so it is safe. For extreme cases switch to a
    # mean-then-centered-sums (3-pass) formulation.
    mean = stats[0] / m_rows
    var = jnp.maximum(stats[1] / m_rows - mean * mean, 0.0)
    inv_std = jax.lax.rsqrt(var + BN_EPS)
    g = jnp.pad(gamma.astype(jnp.float32), (0, cp - cout))
    b = jnp.pad(beta.astype(jnp.float32), (0, cp - cout))
    scale = (g * inv_std).reshape(1, cp)
    shift = (b - mean * g * inv_std).reshape(1, cp)

    # ---- pass 2: recompute conv tile, single FMA (folded BN) + ReLU, lane-dense store ----
    out = pl.pallas_call(
        _apply_kernel,
        out_shape=jax.ShapeDtypeStruct((m_pad, cp), jnp.float32),
        grid=grid,
        in_specs=[
            pl.BlockSpec((tm, k_dim), lambda i: (i, 0)),
            pl.BlockSpec((k_dim, cp), lambda i: (0, 0)),
            pl.BlockSpec((1, cp), lambda i: (0, 0)),
            pl.BlockSpec((1, cp), lambda i: (0, 0)),
        ],
        out_specs=pl.BlockSpec((tm, cp), lambda i: (i, 0)),
        compiler_params=pltpu.CompilerParams(
            dimension_semantics=("parallel",),                           # 2x on v7x megacore
            vmem_limit_bytes=vmem_limit),
    )(a, w_mat, scale, shift)

    y = out[:m_rows, :cout].reshape(n, oh, ow, cout)
    return jnp.transpose(y, (0, 3, 1, 2))                                # back to NCHW


def base_conv_reference(x_nchw, weight_oihw, gamma, beta, stride):
    """Pure-JAX reference matching PyTorch BaseConv forward (training-mode BN), f32."""
    k = weight_oihw.shape[2]
    p = (k - 1) // 2
    y = jax.lax.conv_general_dilated(
        x_nchw.astype(jnp.float32), weight_oihw.astype(jnp.float32),
        window_strides=(stride, stride), padding=((p, p), (p, p)),
        dimension_numbers=("NCHW", "OIHW", "NCHW"))
    mean = y.mean(axis=(0, 2, 3), keepdims=True)
    var = ((y - mean) ** 2).mean(axis=(0, 2, 3), keepdims=True)
    yn = (y - mean) * jax.lax.rsqrt(var + BN_EPS)
    yn = yn * gamma.reshape(1, -1, 1, 1) + beta.reshape(1, -1, 1, 1)
    return jnp.maximum(yn, 0.0)


if __name__ == "__main__":
    key = jax.random.PRNGKey(0)
    k_x, k_w, k_g, k_b = jax.random.split(key, 4)

    N, CIN, H, W = 2, 4, 16, 16
    COUT, K, STRIDE = 8, 3, 1

    x = jax.random.normal(k_x, (N, CIN, H, W), dtype=jnp.float32)
    weight = jax.random.normal(k_w, (COUT, CIN, K, K), dtype=jnp.float32) * 0.1
    # PyTorch BatchNorm2d default init is gamma=1, beta=0; perturb deterministically
    # so the affine part of BN is actually exercised.
    gamma = 1.0 + 0.1 * jax.random.normal(k_g, (COUT,), dtype=jnp.float32)
    beta = 0.1 * jax.random.normal(k_b, (COUT,), dtype=jnp.float32)

    # M = N*OH*OW = 512, tm = 256 -> 2 grid steps, so cross-tile stat accumulation
    # (the correctness-critical path of the restructure) is exercised.
    out = base_conv(x, weight, gamma, beta, STRIDE, tm=256)
    out = jax.block_until_ready(out)

    # Tight check: reference fed the same bf16-quantized matmul operands as the kernel,
    # isolating the algorithm (im2col/matmul/BN/ReLU) from bf16 operand rounding.
    xq = x.astype(jnp.bfloat16).astype(jnp.float32)
    wq = weight.astype(jnp.bfloat16).astype(jnp.float32)
    ref_q = base_conv_reference(xq, wq, gamma, beta, STRIDE)
    assert out.shape == ref_q.shape == (N, COUT, H, W)
    assert jnp.allclose(out, ref_q, atol=1e-3, rtol=1e-3), "mismatch vs bf16-operand reference"

    # Sanity check vs the full-f32 PyTorch-semantics reference (bf16 matmul operands
    # introduce ~1e-2-level deviations by design, per the perf guidance).
    ref = base_conv_reference(x, weight, gamma, beta, STRIDE)
    assert jnp.allclose(out, ref, atol=1e-1, rtol=1e-1), "mismatch vs f32 reference"

    print("KERNEL_OK")
</pallas_src>

<mosaic_0001>
module attributes {stable_mosaic.version = 11 : i64} {
  func.func @_stats_kernel(%arg0: i32, %arg1: memref<256x36xbf16, #tpu.memory_space<vmem>>, %arg2: memref<36x128xbf16, #tpu.memory_space<vmem>>, %arg3: memref<2x128xf32, #tpu.memory_space<vmem>>) attributes {dimension_semantics = [#tpu.dimension_semantics<arbitrary>], iteration_bounds = array<i64: 2>, scalar_prefetch = 0 : i64, scratch_operands = 0 : i64, tpu.core_type = #tpu.core_type<tc>, window_params = [{transform_indices = @transform_0, window_bounds = array<i64: 256, 36>}, {pipeline_mode = #tpu.pipeline_mode<synchronous>, transform_indices = @transform_1, window_bounds = array<i64: 36, 128>}, {pipeline_mode = #tpu.pipeline_mode<synchronous>, transform_indices = @transform_2, window_bounds = array<i64: 2, 128>}]} {
    %c0_i32 = arith.constant 0 : i32
    %0 = arith.cmpi eq, %arg0, %c0_i32 : i32
    %1 = arith.extui %0 : i1 to i32
    %c0_i32_0 = arith.constant 0 : i32
    %2 = arith.cmpi ne, %1, %c0_i32_0 : i32
    scf.if %2 {
      %cst_10 = arith.constant 0.000000e+00 : f32
      %15 = vector.broadcast %cst_10 : f32 to vector<2x128xf32>
      %c0_11 = arith.constant 0 : index
      %c0_12 = arith.constant 0 : index
      %16 = vector.load %arg3[%c0_11, %c0_12] : memref<2x128xf32, #tpu.memory_space<vmem>>, vector<2x128xf32>
      tpu.vector_store %arg3[%c0_11, %c0_12], %15 {strides = array<i32>} : memref<2x128xf32, #tpu.memory_space<vmem>>, vector<2x128xf32>,
    } else {
    }
    %c0 = arith.constant 0 : index
    %c0_1 = arith.constant 0 : index
    %3 = vector.load %arg1[%c0, %c0_1] : memref<256x36xbf16, #tpu.memory_space<vmem>>, vector<256x36xbf16>
    %c0_2 = arith.constant 0 : index
    %c0_3 = arith.constant 0 : index
    %4 = vector.load %arg2[%c0_2, %c0_3] : memref<36x128xbf16, #tpu.memory_space<vmem>>, vector<36x128xbf16>
    %cst = arith.constant dense<0.000000e+00> : vector<256x128xf32>
    %5 = tpu.matmul %3, %4, %cst {dimension_numbers = #tpu.dot_dimension_numbers<[1], [0], [0], [1], [0, 0, 1, 1], [], []>} : vector<256x36xbf16>, vector<36x128xbf16>, vector<256x128xf32> -> vector<256x128xf32>
    %cst_4 = arith.constant dense<0.000000e+00> : vector<128xf32>
    %6 = vector.multi_reduction <add>, %5, %cst_4 [0] : vector<256x128xf32> to vector<128xf32>
    %7 = vector.shape_cast %6 : vector<128xf32> to vector<1x128xf32>
    %8 = arith.mulf %5, %5 : vector<256x128xf32>
    %cst_5 = arith.constant dense<0.000000e+00> : vector<128xf32>
    %9 = vector.multi_reduction <add>, %8, %cst_5 [0] : vector<256x128xf32> to vector<128xf32>
    %10 = vector.shape_cast %9 : vector<128xf32> to vector<1x128xf32>
    %c0_6 = arith.constant 0 : index
    %c0_7 = arith.constant 0 : index
    %11 = vector.load %arg3[%c0_6, %c0_7] : memref<2x128xf32, #tpu.memory_space<vmem>>, vector<2x128xf32>
    %12 = tpu.concatenate %7, %10 in 0 : vector<1x128xf32>, vector<1x128xf32> -> vector<2x128xf32>
    %13 = arith.addf %11, %12 : vector<2x128xf32>
    %c0_8 = arith.constant 0 : index
    %c0_9 = arith.constant 0 : index
    %14 = vector.load %arg3[%c0_8, %c0_9] : memref<2x128xf32, #tpu.memory_space<vmem>>, vector<2x128xf32>
    tpu.vector_store %arg3[%c0_8, %c0_9], %13 {strides = array<i32>} : memref<2x128xf32, #tpu.memory_space<vmem>>, vector<2x128xf32>,
    return
  }
  func.func @transform_0(%arg0: i32) -> (i32, i32) {
    %c0_i32 = arith.constant 0 : i32
    %c0_i32_0 = arith.constant 0 : i32
    return %arg0, %c0_i32 : i32, i32
  }
  func.func @transform_1(%arg0: i32) -> (i32, i32) {
    %c0_i32 = arith.constant 0 : i32
    %c0_i32_0 = arith.constant 0 : i32
    %c0_i32_1 = arith.constant 0 : i32
    return %c0_i32, %c0_i32_0 : i32, i32
  }
  func.func @transform_2(%arg0: i32) -> (i32, i32) {
    %c0_i32 = arith.constant 0 : i32
    %c0_i32_0 = arith.constant 0 : i32
    %c0_i32_1 = arith.constant 0 : i32
    return %c0_i32, %c0_i32_0 : i32, i32
  }
}

</mosaic_0001>

<bundles_post_ra>
// kernel: tpu_custom_call.1
= control target key start
LH: loop header
LB: loop body
LE: loop exit
PB: predicated region body
PF: predicated region fallthrough
CT: control target
= control target key end

     0   :  { %7 = vsyncpa [#allocation3], 0  ;;  %s842_s9 = smov 0   ;;  %s976_s0 = inlined_call_operand.vmem [shape: bf16[512,36], index: 0, kind: input, shape index: {}]   ;;  %s977_s1 = inlined_call_operand.vmem [shape: bf16[36,128], index: 1, kind: input, shape index: {}]   ;;  %s978_s2 = inlined_call_operand.hbm [shape: f32[2,128], index: 2, kind: output, shape index: {}]  }
   0x1 LB: > { %s848_s10 = sadd.s32 4294967295, %s823_s9   ;;  %p644_p0 = scmp.ge.s32.totalorder %s823_s9, 1  ;;  %s823_s9 = sphi %s842_s9, %s13_s9  }
   0x2   : > { %p109_p1 = scmp.lt.s32.totalorder %s823_s9, 3 }
   0x4   : > { %p110_p2 = pnand %p644_p0, %p109_p1 }
   0x5   : > { %s645_s11 = sshll.u32 (!%p110_p2), %s848_s10, 5  ;;  %p647_p4 = scmp.ne.s32.totalorder (!%p110_p2), %s848_s10, 0 }
   0x6   : > { %113 = sbr.rel (%p110_p2) target bundleno = 342 (0x156), region = 28  ;;  %p127_p3 = scmp.lt.s32.totalorder (!%p110_p2), %s645_s11, 63 }
   0xd   : > { %s980_s11 = smov (!%p127_p3, %s645_s11), 63  ;;  %136 = sbr.rel (%p647_p4) target bundleno = 20 (0x14), region = 32 }
   0xe   : > { %s646_s12 = sshll.u32 %s980_s11, 2  ;;  %v825_v0 = vmov (!%p647_p4), 0.0  }
   0xf   : > { %s856_s15 = scalar_lea.vmem %s976_s0, %s646_s12  ;;  %137 = vst [vmem:[#allocation2] sm:$0x3] (!%p647_p4), %v825_v0 }
  0x14 PF: > { %v768_v1 = vld [vmem:[%s977_s1] sm:$0xff]   ;;  %v769_v2 = vld [vmem:[%s977_s1 + $0x8] sm:$0xff]   ;;  %vm270_vm0 = vcmask 293888   ;;  %v770_v3 = vld [vmem:[%s977_s1 + $0x10] ss:$0 sps:$4 sm:$0x33]  }
  0x15   : > { %706 = vmatprep.subr.bf16.mxu0 %v768_v1  ;;  %v771_v4 = vld [vmem:[%s856_s15] sm:$0xff]   ;;  %744 = vmatprep.subr.bf16.mxu1 %v768_v1  ;;  %vm319_vm1 = vcmask 1041408   ;;  %v772_v6 = vld [vmem:[%s856_s15 + $0x8] sm:$0xff]   ;;  %v773_v7 = vld [vmem:[%s856_s15 + $0x10] sm:$0xff]   ;;  %vm591_vm2 = vcmask 1040384   ;;  %s826_s22 = smov [#allocation2]  }
  0x16   : > { %707 = vmatpush3.bf16.msra.mxu0 %v768_v1  ;;  %747 = vmatpush3.bf16.msra.mxu1 %v768_v1  ;;  %v321_v5 = vsel %vm319_vm1, %v770_v3, 0  ;;  %v779_v8 = vld [vmem:[%s856_s15 + $0x40] sm:$0xff]   ;;  %v780_v9 = vld [vmem:[%s856_s15 + $0x48] sm:$0xff]   ;;  %v781_v10 = vld [vmem:[%s856_s15 + $0x50] sm:$0xff]   ;;  %s602_s23 = sshll.u32 %s826_s22, 4  ;;  %p756_p5 = scmp.eq.s32.totalorder %s848_s10, 1  ;;  %s603_s23 = int_to_ptr.vmem [resolvable:$true] %s602_s23 }
  0x17   : > { %708 = vmatprep.subr.bf16.mxu0 %v769_v2  ;;  %712 = vmatprep.mubr.msk.bf16.mxu0 %vm270_vm0, %v771_v4  ;;  %v774_v11 = vld [vmem:[%s856_s15 + $0x18] sm:$0xff]   ;;  %v775_v13 = vld [vmem:[%s856_s15 + $0x20] sm:$0xff]   ;;  %v776_v15 = vld [vmem:[%s856_s15 + $0x28] sm:$0xff]   ;;  %s787_s24 = scalar_lea.vmem %s603_s23, 32  ;;  %p794_p9 = scmp.lt.s32.totalorder %s603_s23, %s603_s23 }
  0x18   : > { %745 = vmatprep.subr.bf16.mxu1 %v769_v2  ;;  %728 = vmatprep.mubr.msk.bf16.mxu1 %vm270_vm0, %v779_v8  ;;  %v782_v12 = vld [vmem:[%s856_s15 + $0x58] sm:$0xff]   ;;  %v783_v14 = vld [vmem:[%s856_s15 + $0x60] sm:$0xff]   ;;  %v784_v16 = vld [vmem:[%s856_s15 + $0x68] sm:$0xff]   ;;  %p788_p6 = scmp.ne.s32.totalorder %s603_s23, %s787_s24  ;;  %p795_p10 = scmp.lt.s32.totalorder %s787_s24, %s787_s24 }
  0x19   : > { %v777_v17 = vld [vmem:[%s856_s15 + $0x30] sm:$0xff]   ;;  %v778_v19 = vld [vmem:[%s856_s15 + $0x38] sm:$0xff]  }
  0x1a   : > { %709 = vmatpush3.bf16.msra.mxu0 %v769_v2  ;;  %748 = vmatpush3.bf16.msra.mxu1 %v769_v2  ;;  %v785_v18 = vld [vmem:[%s856_s15 + $0x70] sm:$0xff]   ;;  %v786_v20 = vld [vmem:[%s856_s15 + $0x78] sm:$0xff]   ;;  %p789_p7 = pnand %p788_p6, %p756_p5  ;;  %p796_p11 = por %p795_p10, %p794_p9 }
  0x1b   : > { %750 = vmatprep.subr.msk.bf16.mxu0 %vm319_vm1, %v770_v3  ;;  %751 = vmatprep.subr.msk.bf16.mxu1 %vm319_vm1, %v770_v3 }
  0x1c   : > { %p790_p8 = pneg %p789_p7 }
  0x1e   : > { %711 = vmatpush3.bf16.msra.mxu0 %v321_v5  ;;  %749 = vmatpush3.bf16.msra.mxu1 %v321_v5  ;;  %p797_p12 = pnand %p796_p11, %p790_p8 }
  0x21   : > { %713 = vmatmul.mubr.msk.bf16.vlgmr.msra.gmra.mrb[0].mxu0 %vm270_vm0, %v772_v6  ;;  %729 = vmatmul.mubr.msk.bf16.vlgmr.msra.gmra.mrb[0].mxu1 %vm270_vm0, %v780_v9 }
  0x22   : > { %716 = vmatprep.mubr.msk.bf16.mxu0 %vm270_vm0, %v773_v7  ;;  %732 = vmatprep.mubr.msk.bf16.mxu1 %vm270_vm0, %v781_v10 }
  0x29   : > { %717 = vmatmul.mubr.msk.bf16.gmra.mrb[4].mxu0 %vm270_vm0, %v774_v11  ;;  %733 = vmatmul.mubr.msk.bf16.gmra.mrb[4].mxu1 %vm270_vm0, %v782_v12 }
  0x2a   : > { %720 = vmatprep.mubr.msk.bf16.mxu0 %vm270_vm0, %v775_v13  ;;  %736 = vmatprep.mubr.msk.bf16.mxu1 %vm270_vm0, %v783_v14 }
  0x31   : > { %721 = vmatmul.mubr.msk.bf16.gmra.mrb[8].mxu0 %vm270_vm0, %v776_v15  ;;  %737 = vmatmul.mubr.msk.bf16.gmra.mrb[8].mxu1 %vm270_vm0, %v784_v16 }
  0x32   : > { %724 = vmatprep.mubr.msk.bf16.mxu0 %vm270_vm0, %v777_v17  ;;  %740 = vmatprep.mubr.msk.bf16.mxu1 %vm270_vm0, %v785_v18 }
  0x39   : > { %725 = vmatmul.mubr.msk.bf16.gmra.mrb[12].mxu0 %vm270_vm0, %v778_v19  ;;  %741 = vmatmul.mubr.msk.bf16.gmra.mrb[12].mxu1 %vm270_vm0, %v786_v20 }
  0xf4   : > { %v714_v21 = vpop.f32.mrb[0].mxu0  ;;  %v900_v22 = vpop.f32.mrb[0].mxu1 }
  0xf5   : > { %v357_v23 = vpop.f32.mrb[1].mxu0  ;;  %v902_v24 = vpop.f32.mrb[1].mxu1  ;;  %v523_v32 = vmul.f32 %v714_v21, %v714_v21 }
  0xf6   : > { %v715_v25 = vpop.f32.mrb[2].mxu0  ;;  %v904_v26 = vpop.f32.mrb[2].mxu1  ;;  %v521_v29 = vmul.f32 %v357_v23, %v357_v23 }
  0xf7   : > { %v360_v27 = vpop.f32.mrb[3].mxu0  ;;  %v906_v28 = vpop.f32.mrb[3].mxu1  ;;  %v524_v35 = vmul.f32 %v715_v25, %v715_v25 }
  0xf8   : > { %v484_v30 = vadd.f32 %v360_v27, %v357_v23  ;;  %v522_v31 = vmul.f32 %v360_v27, %v360_v27 }
  0xfa   : > { %v485_v33 = vadd.f32 %v714_v21, %v484_v30  ;;  %v553_v34 = vadd.f32 %v522_v31, %v521_v29 }
  0xfc   : > { %v554_v36 = vadd.f32 %v553_v34, %v523_v32  ;;  %v718_v37 = vpop.f32.mrb[4].mxu0  ;;  %v486_v38 = vadd.f32 %v715_v25, %v485_v33  ;;  %v908_v39 = vpop.f32.mrb[4].mxu1 }
  0xfd   : > { %v373_v40 = vpop.f32.mrb[5].mxu0  ;;  %v910_v41 = vpop.f32.mrb[5].mxu1  ;;  %v527_v52 = vmul.f32 %v718_v37, %v718_v37 }
  0xfe   : > { %v487_v42 = vadd.f32 %v486_v38, %v373_v40  ;;  %v525_v43 = vmul.f32 %v373_v40, %v373_v40  ;;  %v555_v44 = vadd.f32 %v554_v36, %v524_v35  ;;  %v719_v45 = vpop.f32.mrb[6].mxu0  ;;  %v912_v46 = vpop.f32.mrb[6].mxu1  ;;  %v537_v38 = vmul.f32 %v902_v24, %v902_v24 }
  0xff   : > { %v376_v47 = vpop.f32.mrb[7].mxu0  ;;  %v914_v48 = vpop.f32.mrb[7].mxu1  ;;  %v528_v55 = vmul.f32 %v719_v45, %v719_v45 }
 0x100   : > { %v556_v49 = vadd.f32 %v555_v44, %v525_v43  ;;  %v488_v50 = vadd.f32 %v487_v42, %v376_v47  ;;  %v526_v51 = vmul.f32 %v376_v47, %v376_v47  ;;  %v539_v47 = vmul.f32 %v900_v22, %v900_v22 }
 0x102   : > { %v489_v53 = vadd.f32 %v718_v37, %v488_v50  ;;  %v557_v54 = vadd.f32 %v556_v49, %v526_v51  ;;  %v540_v51 = vmul.f32 %v904_v26, %v904_v26 }
 0x104   : > { %v558_v56 = vadd.f32 %v557_v54, %v527_v52  ;;  %v722_v57 = vpop.f32.mrb[8].mxu0  ;;  %v490_v58 = vadd.f32 %v719_v45, %v489_v53  ;;  %v916_v59 = vpop.f32.mrb[8].mxu1  ;;  %v538_v45 = vmul.f32 %v906_v28, %v906_v28 }
 0x105   : > { %v389_v60 = vpop.f32.mrb[9].mxu0  ;;  %v453_v61 = vpop.f32.mrb[9].mxu1  ;;  %v531_v8 = vmul.f32 %v722_v57, %v722_v57 }
 0x106   : > { %v491_v62 = vadd.f32 %v490_v58, %v389_v60  ;;  %v529_v63 = vmul.f32 %v389_v60, %v389_v60  ;;  %v559_v0 = vadd.f32 %v558_v56, %v528_v55  ;;  %v723_v1 = vpop.f32.mrb[10].mxu0  ;;  %v918_v2 = vpop.f32.mrb[10].mxu1 }
 0x107   : > { %v392_v3 = vpop.f32.mrb[11].mxu0  ;;  %v456_v4 = vpop.f32.mrb[11].mxu1  ;;  %v532_v11 = vmul.f32 %v723_v1, %v723_v1 }
 0x108   : > { %v560_v5 = vadd.f32 %v559_v0, %v529_v63  ;;  %v492_v6 = vadd.f32 %v491_v62, %v392_v3  ;;  %v530_v7 = vmul.f32 %v392_v3, %v392_v3 }
 0x10a   : > { %v493_v9 = vadd.f32 %v722_v57, %v492_v6  ;;  %v561_v10 = vadd.f32 %v560_v5, %v530_v7  ;;  %v542_v57 = vmul.f32 %v914_v48, %v914_v48  ;;  %v546_v6 = vmul.f32 %v456_v4, %v456_v4 }
 0x10c   : > { %v562_v12 = vadd.f32 %v561_v10, %v531_v8  ;;  %v726_v13 = vpop.f32.mrb[12].mxu0  ;;  %v494_v14 = vadd.f32 %v723_v1, %v493_v9  ;;  %v742_v15 = vpop.f32.mrb[12].mxu1 }
 0x10d   : > { %v405_v16 = vpop.f32.mrb[13].mxu0  ;;  %v469_v17 = vpop.f32.mrb[13].mxu1  ;;  %v535_v32 = vmul.f32 %v726_v13, %v726_v13 }
 0x10e   : > { %v495_v18 = vadd.f32 %v494_v14, %v405_v16  ;;  %v533_v19 = vmul.f32 %v405_v16, %v405_v16  ;;  %v563_v20 = vadd.f32 %v562_v12, %v532_v11  ;;  %v727_v21 = vpop.f32.mrb[14].mxu0  ;;  %v743_v23 = vpop.f32.mrb[14].mxu1  ;;  %v549_v11 = vmul.f32 %v469_v17, %v469_v17 }
 0x10f   : > { %v408_v25 = vpop.f32.mrb[15].mxu0  ;;  %v472_v27 = vpop.f32.mrb[15].mxu1  ;;  %v536_v35 = vmul.f32 %v727_v21, %v727_v21  ;;  %v551_v16 = vmul.f32 %v742_v15, %v742_v15 }
 0x110   : > { %v564_v29 = vadd.f32 %v563_v20, %v533_v19  ;;  %v496_v30 = vadd.f32 %v495_v18, %v408_v25  ;;  %v534_v31 = vmul.f32 %v408_v25, %v408_v25  ;;  %v550_v14 = vmul.f32 %v472_v27, %v472_v27 }
 0x111   : > { %v552_v19 = vmul.f32 %v743_v23, %v743_v23 }
 0x112   : > { %v497_v33 = vadd.f32 %v726_v13, %v496_v30  ;;  %v565_v34 = vadd.f32 %v564_v29, %v534_v31 }
 0x114   : > { %v566_v36 = vadd.f32 %v565_v34, %v535_v32  ;;  %v498_v37 = vadd.f32 %v727_v21, %v497_v33 }
 0x116   : > { %v499_v40 = vadd.f32 %v498_v37, %v902_v24  ;;  %v567_v42 = vadd.f32 %v566_v36, %v536_v35  ;;  %v541_v24 = vmul.f32 %v910_v41, %v910_v41  ;;  %v590_v36 = vld [vmem:[#allocation2] sm:$0x3] }
 0x118   : > { %v568_v43 = vadd.f32 %v567_v42, %v537_v38  ;;  %v500_v44 = vadd.f32 %v499_v40, %v906_v28 }
 0x11a   : > { %v501_v49 = vadd.f32 %v900_v22, %v500_v44  ;;  %v569_v50 = vadd.f32 %v568_v43, %v538_v45  ;;  %v543_v22 = vmul.f32 %v908_v39, %v908_v39 }
 0x11c   : > { %v570_v52 = vadd.f32 %v569_v50, %v539_v47  ;;  %v502_v53 = vadd.f32 %v904_v26, %v501_v49  ;;  %v544_v26 = vmul.f32 %v912_v46, %v912_v46 }
 0x11e   : > { %v503_v54 = vadd.f32 %v502_v53, %v910_v41  ;;  %v571_v55 = vadd.f32 %v570_v52, %v540_v51  ;;  %v545_v41 = vmul.f32 %v453_v61, %v453_v61 }
 0x120   : > { %v572_v56 = vadd.f32 %v571_v55, %v541_v24  ;;  %v504_v28 = vadd.f32 %v503_v54, %v914_v48  ;;  %v547_v48 = vmul.f32 %v916_v59, %v916_v59 }
 0x122   : > { %v505_v58 = vadd.f32 %v908_v39, %v504_v28  ;;  %v573_v60 = vadd.f32 %v572_v56, %v542_v57  ;;  %v548_v39 = vmul.f32 %v918_v2, %v918_v2 }
 0x124   : > { %v574_v62 = vadd.f32 %v573_v60, %v543_v22  ;;  %v506_v63 = vadd.f32 %v912_v46, %v505_v58 }
 0x126   : > { %v507_v0 = vadd.f32 %v506_v63, %v453_v61  ;;  %v575_v1 = vadd.f32 %v574_v62, %v544_v26 }
 0x128   : > { %v576_v3 = vadd.f32 %v575_v1, %v545_v41  ;;  %v508_v5 = vadd.f32 %v507_v0, %v456_v4 }
 0x12a   : > { %v509_v7 = vadd.f32 %v916_v59, %v508_v5  ;;  %v577_v8 = vadd.f32 %v576_v3, %v546_v6 }
 0x12c   : > { %v578_v9 = vadd.f32 %v577_v8, %v547_v48  ;;  %v510_v10 = vadd.f32 %v918_v2, %v509_v7 }
 0x12e   : > { %v511_v46 = vadd.f32 %v510_v10, %v469_v17  ;;  %v579_v12 = vadd.f32 %v578_v9, %v548_v39 }
 0x130   : > { %v580_v61 = vadd.f32 %v579_v12, %v549_v11  ;;  %v512_v13 = vadd.f32 %v511_v46, %v472_v27 }
 0x132   : > { %v513_v4 = vadd.f32 %v742_v15, %v512_v13  ;;  %v581_v18 = vadd.f32 %v580_v61, %v550_v14 }
 0x134   : > { %v514_v20 = vadd.f32 %v743_v23, %v513_v4  ;;  %v582_v21 = vadd.f32 %v581_v18, %v551_v16 }
 0x136   : > { %v515_v59 = vrot.slane %v514_v20, 4  ;;  %v583_v25 = vadd.f32 %v582_v21, %v552_v19 }
 0x138   : > { %v516_v29 = vadd.f32 %v515_v59, %v514_v20  ;;  %v584_v30 = vrot.slane %v583_v25, 4 }
 0x13a   : > { %v517_v31 = vrot.slane %v516_v29, 2  ;;  %v585_v32 = vadd.f32 %v584_v30, %v583_v25 }
 0x13c   : > { %v518_v2 = vadd.f32 %v517_v31, %v516_v29  ;;  %v586_v33 = vrot.slane %v585_v32, 2 }
 0x13e   : > { %v519_v17 = vrot.slane %v518_v2, 1  ;;  %v587_v34 = vadd.f32 %v586_v33, %v585_v32 }
 0x140   : > { %v588_v35 = vrot.slane %v587_v34, 1  ;;  %v520_v27 = vadd.f32 %v519_v17, %v518_v2 }
 0x142   : > { %v589_v15 = vadd.f32 %v588_v35, %v587_v34 }
 0x144   : > { %v592_v23 = vsel %vm591_vm2, %v520_v27, %v589_v15 }
 0x145   : > { %v593_v37 = vadd.f32 %v592_v23, %v590_v36 }
 0x147   : > { %594 = vst [vmem:[#allocation2] sm:$0x3] %v593_v37 }
 0x148   : > { %800 = shalt.err (!%p797_p12)
}
 0x149   : > { %s801_s27 = scalar_lea.hbm %s978_s2, 32 }
 0x14a   : > { %p802_p13 = scmp.ne.s32.totalorder %s978_s2, %s801_s27  ;;  %p807_p2 = scmp.lt.u32.totalorder %s801_s27, %s978_s2 }
 0x14c   : > { %p803_p0 = pnand %p802_p13, %p756_p5 }
 0x14e   : > { %p804_p1 = pneg %p803_p0 }
 0x150   : > { %p809_p3 = pnand %p807_p2, %p804_p1 }
 0x152   : > { %812 = shalt.err (!%p809_p3)
}
 0x153   : > { %753 = dma.vmem_to_hbm [thread:$0]  (%p756_p5), %s603_s23, 32, %s978_s2, [#allocation3]  }
 0x154   : > { %818 = dma.done.wait (%p756_p5), [#allocation3], 32  }
 0x155   : > { %820 = vsyncadd (%p756_p5), [#allocation3], 4294967264 }
 0x156 PF: > { %s13_s9 = sadd.s32 1, %s823_s9  }
 0x157   : > { %p10_p4 = scmp.ge.s32.totalorder %s13_s9, 4  }
 0x159   :  { %12 = sbr.rel (!%p10_p4) target bundleno = 1 (0x1), region = 59 }
 0x160   :  { %615 = vsyncpa [#allocation3], 1 }
 0x161   :  { %617 = vsyncpa [#allocation3 + $0x1], 1 }

</bundles_post_ra>
